<compile_context>
chip_gen: v7x
topology: tpu7x:2x2x1
jax: 0.10.0
libtpu: 0.0.40
codegen_flags: <defaults>
</compile_context>

<pallas_src>
import functools
import math

import jax
import jax.numpy as jnp
from jax.experimental import pallas as pl
from jax.experimental.pallas import tpu as pltpu

# ---------------- model configuration (small, synthetic) ----------------
B, T = 2, 8
N_EMBD = 32
N_HEAD = 4
N_QUERY_GROUPS = 4                    # == N_HEAD -> plain MHA (no repeat_interleave)
HEAD_SIZE = N_EMBD // N_HEAD          # 8
INTERMEDIATE = 64
NORM_EPS = 1e-5
ATTN_SCALE = 1.0 / math.sqrt(HEAD_SIZE)


def _dot_nt(a, b):
    """a (T, d) contracted with b (T, d) on the last dim -> (T, T); no .T op."""
    return jax.lax.dot_general(a, b, (((1,), (1,)), ((), ())),
                               preferred_element_type=jnp.float32)


# ---------------- fused Pallas kernel (whole Block, one grid step per batch) ----
def _fused_block_kernel(x_ref, cos_ref, sin_ref, bias_ref,
                        n1w_ref, attnw_ref, projw_ref, n2w_ref,
                        fc12_ref, mprojw_ref, o_ref,
                        *, scale, eps, n_head, n_query_groups, head_size):
    x = x_ref[0].astype(jnp.float32)                              # (T, C)

    # ---- RMSNorm 1 ----
    n1 = x * jax.lax.rsqrt(jnp.mean(x * x, axis=-1, keepdims=True) + eps) * n1w_ref[...]

    # ---- fused QKV projection (columns pre-permuted to [Qx1|Qx2|Kx1|Kx2|V]) ----
    qkv = jnp.dot(n1, attnw_ref[...], preferred_element_type=jnp.float32)

    half = head_size // 2
    hh = n_head * half
    gh = n_query_groups * half
    q1 = qkv[:, :hh]                                              # (T, H*half)
    q2 = qkv[:, hh:2 * hh]
    k1 = qkv[:, 2 * hh:2 * hh + gh]                               # (T, G*half)
    k2 = qkv[:, 2 * hh + gh:2 * hh + 2 * gh]
    v_all = qkv[:, 2 * hh + 2 * gh:]                              # (T, G*D), head-major

    cos_q = cos_ref[...].astype(jnp.float32)                      # (T, H*half), per-head tiled
    sin_q = sin_ref[...].astype(jnp.float32)
    cos_k = cos_q[:, :gh]
    sin_k = sin_q[:, :gh]

    def elu_plus1(r):
        # elu(r) + 1 == r + 1 for r > 0, exp(r) otherwise  (exp -> EUP slot)
        return jnp.where(r > 0, r + 1.0, jnp.exp(r))

    # ---- RoPE (rotate-half on the split layout) + elu+1, whole blocks at once ----
    qa = elu_plus1(q1 * cos_q - q2 * sin_q)                       # (T, H*half)
    qb = elu_plus1(q2 * cos_q + q1 * sin_q)
    ka = elu_plus1(k1 * cos_k - k2 * sin_k)                       # (T, G*half)
    kb = elu_plus1(k2 * cos_k + k1 * sin_k)

    bias = bias_ref[...].astype(jnp.float32)                      # (T, T) 0/1 causal mask
    q_per_kv = n_head // n_query_groups

    # ---- per-head masked & row-normalized linear attention ----
    y_cols = []
    for h in range(n_head):
        g = h // q_per_kv
        s = (_dot_nt(qa[:, h * half:(h + 1) * half], ka[:, g * half:(g + 1) * half]) +
             _dot_nt(qb[:, h * half:(h + 1) * half], kb[:, g * half:(g + 1) * half])) * scale
        s = s * bias                                              # multiplicative causal mask
        s = s / (jnp.sum(s, axis=-1, keepdims=True) + 1e-8)       # kernel='elu', normalize=True
        y_cols.append(jnp.dot(s, v_all[:, g * head_size:(g + 1) * head_size],
                              preferred_element_type=jnp.float32))
    y = jnp.concatenate(y_cols, axis=-1)                          # (T, C)

    # ---- output projection + residual ----
    x = x + jnp.dot(y, projw_ref[...], preferred_element_type=jnp.float32)

    # ---- RMSNorm 2 + SwiGLU MLP (fc_1|fc_2 fused) + residual ----
    n2 = x * jax.lax.rsqrt(jnp.mean(x * x, axis=-1, keepdims=True) + eps) * n2w_ref[...]
    h12 = jnp.dot(n2, fc12_ref[...], preferred_element_type=jnp.float32)
    inter = h12.shape[-1] // 2
    h1 = h12[:, :inter]
    h2 = h12[:, inter:]
    gate = h1 * jax.nn.sigmoid(h1) * h2                           # SiLU(fc_1(x)) * fc_2(x)
    ffn = jnp.dot(gate, mprojw_ref[...], preferred_element_type=jnp.float32)

    o_ref[0] = (x + ffn).astype(o_ref.dtype)


def _permute_qkv_weight(w):
    """(C, (H+2G)*D) per-group interleaved -> (C, [Q_x1 | Q_x2 | K_x1 | K_x2 | V])."""
    c_in = w.shape[0]
    qpk = N_HEAD // N_QUERY_GROUPS
    half = HEAD_SIZE // 2
    w4 = w.reshape(c_in, N_QUERY_GROUPS, qpk + 2, HEAD_SIZE)
    q = w4[:, :, :qpk, :].reshape(c_in, N_HEAD, HEAD_SIZE)        # head-major (group, inner)
    k = w4[:, :, qpk, :]                                          # (C, G, D)
    v = w4[:, :, qpk + 1, :].reshape(c_in, N_QUERY_GROUPS * HEAD_SIZE)
    return jnp.concatenate([
        q[:, :, :half].reshape(c_in, N_HEAD * half),
        q[:, :, half:].reshape(c_in, N_HEAD * half),
        k[:, :, :half].reshape(c_in, N_QUERY_GROUPS * half),
        k[:, :, half:].reshape(c_in, N_QUERY_GROUPS * half),
        v,
    ], axis=1)


def block_forward(params, x, rope, attention_bias):
    cos, sin = rope                                               # (T, D//2)
    Bx, Tx, C = x.shape
    half = HEAD_SIZE // 2

    attn_w = _permute_qkv_weight(params["attn_w"])                # (C, (H+2G)*D)
    fc12_w = jnp.concatenate([params["fc1_w"], params["fc2_w"]], axis=1)  # (C, 2*I)
    cos_h = jnp.tile(cos, (1, N_HEAD))                            # (T, H*half)
    sin_h = jnp.tile(sin, (1, N_HEAD))
    bias2d = attention_bias[0, 0, :Tx, :Tx]
    n1w = params["norm1_w"].reshape(1, C)
    n2w = params["norm2_w"].reshape(1, C)
    qkv_out = attn_w.shape[1]

    kernel = functools.partial(
        _fused_block_kernel,
        scale=ATTN_SCALE, eps=NORM_EPS,
        n_head=N_HEAD, n_query_groups=N_QUERY_GROUPS, head_size=HEAD_SIZE)

    full = lambda *shape: pl.BlockSpec(shape, lambda b: (0,) * len(shape))

    return pl.pallas_call(
        kernel,
        grid=(Bx,),
        out_shape=jax.ShapeDtypeStruct((Bx, Tx, C), x.dtype),
        in_specs=[
            pl.BlockSpec((1, Tx, C), lambda b: (b, 0, 0)),        # x (per-batch block)
            full(Tx, N_HEAD * half),                              # cos (per-head tiled)
            full(Tx, N_HEAD * half),                              # sin (per-head tiled)
            full(Tx, Tx),                                         # causal 0/1 mask
            full(1, C),                                           # norm_1 weight
            full(C, qkv_out),                                     # qkv weight (permuted)
            full(C, C),                                           # attn proj weight
            full(1, C),                                           # norm_2 weight
            full(C, 2 * INTERMEDIATE),                            # [fc_1 | fc_2] weight
            full(INTERMEDIATE, C),                                # mlp proj weight
        ],
        out_specs=pl.BlockSpec((1, Tx, C), lambda b: (b, 0, 0)),
        compiler_params=pltpu.CompilerParams(
            dimension_semantics=("parallel",)),                   # megacore / 2-TC on v7x
    )(x, cos_h, sin_h, bias2d, n1w, attn_w, params["proj_w"], n2w,
      fc12_w, params["mlp_proj_w"])


# ---------------- pure-JAX reference (same math as the PyTorch module) ----------
def apply_rope(x, cos, sin):
    d2 = x.shape[-1] // 2
    x1, x2 = x[..., :d2], x[..., d2:]
    c = cos[None, :, None, :]
    s = sin[None, :, None, :]
    return jnp.concatenate([x1 * c - x2 * s, x2 * c + x1 * s], axis=-1)


def block_reference(params, x, rope, attention_bias):
    cos, sin = rope
    Bx, Tx, C = x.shape

    def rms(z, w):
        ms = jnp.mean(z * z, axis=-1, keepdims=True)
        return z * jax.lax.rsqrt(ms + NORM_EPS) * w

    n1 = rms(x, params["norm1_w"])
    qkv = n1 @ params["attn_w"]
    q_per_kv = N_HEAD // N_QUERY_GROUPS
    qkv = qkv.reshape(Bx, Tx, N_QUERY_GROUPS, q_per_kv + 2, HEAD_SIZE)
    q = qkv[..., :q_per_kv, :].reshape(Bx, Tx, -1, HEAD_SIZE)
    k = qkv[..., q_per_kv:q_per_kv + 1, :].reshape(Bx, Tx, -1, HEAD_SIZE)
    v = qkv[..., q_per_kv + 1:, :].reshape(Bx, Tx, -1, HEAD_SIZE)
    q = jax.nn.elu(apply_rope(q, cos, sin)) + 1.0
    k = jax.nn.elu(apply_rope(k, cos, sin)) + 1.0
    q, k, v = (jnp.transpose(t, (0, 2, 1, 3)) for t in (q, k, v))
    s = jnp.einsum("bhqd,bhkd->bhqk", q, k) * ATTN_SCALE
    s = s * attention_bias[:, :, :Tx, :Tx]
    s = s / (jnp.sum(s, axis=-1, keepdims=True) + 1e-8)
    y = jnp.einsum("bhqk,bhkd->bhqd", s, v)
    y = jnp.transpose(y, (0, 2, 1, 3)).reshape(Bx, Tx, C)
    h = y @ params["proj_w"]
    x = x + h
    n2 = rms(x, params["norm2_w"])
    h1 = n2 @ params["fc1_w"]
    h2 = n2 @ params["fc2_w"]
    ffn = (h1 * jax.nn.sigmoid(h1) * h2) @ params["mlp_proj_w"]
    return x + ffn


# ---------------- parameter / input construction ----------------
def make_params(key):
    ks = jax.random.split(key, 6)
    qkv_out = (N_HEAD + 2 * N_QUERY_GROUPS) * HEAD_SIZE

    def w(k, shape):
        return 0.02 * jax.random.normal(k, shape, dtype=jnp.float32)

    return {
        "norm1_w": jnp.ones((N_EMBD,), jnp.float32),
        "norm2_w": jnp.ones((N_EMBD,), jnp.float32),
        "attn_w": w(ks[0], (N_EMBD, qkv_out)),
        "proj_w": w(ks[1], (N_EMBD, N_EMBD)),
        "fc1_w": w(ks[2], (N_EMBD, INTERMEDIATE)),
        "fc2_w": w(ks[3], (N_EMBD, INTERMEDIATE)),
        "mlp_proj_w": w(ks[4], (INTERMEDIATE, N_EMBD)),
    }


def build_rope(seq_len, head_size, base=10000.0):
    half = head_size // 2
    inv_freq = 1.0 / (base ** (jnp.arange(0, half, dtype=jnp.float32) / half))
    t = jnp.arange(seq_len, dtype=jnp.float32)
    freqs = jnp.outer(t, inv_freq)                 # (T, D//2)
    return jnp.cos(freqs), jnp.sin(freqs)


if __name__ == "__main__":
    key = jax.random.PRNGKey(0)
    k_param, k_x = jax.random.split(key)
    params = make_params(k_param)

    x = jax.random.normal(k_x, (B, T, N_EMBD), dtype=jnp.float32)
    rope = build_rope(T, HEAD_SIZE)
    # causal 0/1 mask, shape (1, 1, T, T) (multiplicative, as in the PyTorch module)
    attention_bias = jnp.tril(jnp.ones((T, T), jnp.float32))[None, None, :, :]

    out = jax.jit(block_forward)(params, x, rope, attention_bias)
    out = jax.block_until_ready(out)

    ref = block_reference(params, x, rope, attention_bias)
    assert out.shape == (B, T, N_EMBD)
    assert bool(jnp.all(jnp.isfinite(out)))
    assert bool(jnp.allclose(out, ref, rtol=1e-2, atol=1e-2)), "mismatch vs reference"

    print("KERNEL_OK")
</pallas_src>

<mosaic_0001>
module attributes {stable_mosaic.version = 11 : i64} {
  func.func @_fused_block_kernel(%arg0: i32, %arg1: memref<1x8x32xf32, #tpu.memory_space<vmem>>, %arg2: memref<8x16xf32, #tpu.memory_space<vmem>>, %arg3: memref<8x16xf32, #tpu.memory_space<vmem>>, %arg4: memref<8x8xf32, #tpu.memory_space<vmem>>, %arg5: memref<1x32xf32, #tpu.memory_space<vmem>>, %arg6: memref<32x96xf32, #tpu.memory_space<vmem>>, %arg7: memref<32x32xf32, #tpu.memory_space<vmem>>, %arg8: memref<1x32xf32, #tpu.memory_space<vmem>>, %arg9: memref<32x128xf32, #tpu.memory_space<vmem>>, %arg10: memref<64x32xf32, #tpu.memory_space<vmem>>, %arg11: memref<1x8x32xf32, #tpu.memory_space<vmem>>) attributes {dimension_semantics = [#tpu.dimension_semantics<parallel>], iteration_bounds = array<i64: 2>, scalar_prefetch = 0 : i64, scratch_operands = 0 : i64, tpu.core_type = #tpu.core_type<tc>, window_params = [{transform_indices = @transform_0, window_bounds = array<i64: 1, 8, 32>}, {pipeline_mode = #tpu.pipeline_mode<synchronous>, transform_indices = @transform_1, window_bounds = array<i64: 8, 16>}, {pipeline_mode = #tpu.pipeline_mode<synchronous>, transform_indices = @transform_2, window_bounds = array<i64: 8, 16>}, {pipeline_mode = #tpu.pipeline_mode<synchronous>, transform_indices = @transform_3, window_bounds = array<i64: 8, 8>}, {pipeline_mode = #tpu.pipeline_mode<synchronous>, transform_indices = @transform_4, window_bounds = array<i64: 1, 32>}, {pipeline_mode = #tpu.pipeline_mode<synchronous>, transform_indices = @transform_5, window_bounds = array<i64: 32, 96>}, {pipeline_mode = #tpu.pipeline_mode<synchronous>, transform_indices = @transform_6, window_bounds = array<i64: 32, 32>}, {pipeline_mode = #tpu.pipeline_mode<synchronous>, transform_indices = @transform_7, window_bounds = array<i64: 1, 32>}, {pipeline_mode = #tpu.pipeline_mode<synchronous>, transform_indices = @transform_8, window_bounds = array<i64: 32, 128>}, {pipeline_mode = #tpu.pipeline_mode<synchronous>, transform_indices = @transform_9, window_bounds = array<i64: 64, 32>}, {transform_indices = @transform_10, window_bounds = array<i64: 1, 8, 32>}]} {
    %c0 = arith.constant 0 : index
    %c0_0 = arith.constant 0 : index
    %c0_1 = arith.constant 0 : index
    %0 = vector.load %arg1[%c0, %c0_0, %c0_1] : memref<1x8x32xf32, #tpu.memory_space<vmem>>, vector<1x8x32xf32>
    %1 = vector.shape_cast %0 : vector<1x8x32xf32> to vector<8x32xf32>
    %2 = arith.mulf %1, %1 : vector<8x32xf32>
    %cst = arith.constant dense<0.000000e+00> : vector<8xf32>
    %3 = vector.multi_reduction <add>, %2, %cst [1] : vector<8x32xf32> to vector<8xf32>
    %4 = vector.shape_cast %3 : vector<8xf32> to vector<8x1xf32>
    %cst_2 = arith.constant 3.200000e+01 : f32
    %5 = vector.broadcast %cst_2 : f32 to vector<8x1xf32>
    %6 = arith.divf %4, %5 : vector<8x1xf32>
    %cst_3 = arith.constant 9.99999974E-6 : f32
    %7 = vector.broadcast %cst_3 : f32 to vector<8x1xf32>
    %8 = arith.addf %6, %7 : vector<8x1xf32>
    %9 = math.rsqrt %8 : vector<8x1xf32>
    %10 = vector.broadcast %9 : vector<8x1xf32> to vector<8x32xf32>
    %11 = arith.mulf %1, %10 : vector<8x32xf32>
    %c0_4 = arith.constant 0 : index
    %c0_5 = arith.constant 0 : index
    %12 = vector.load %arg5[%c0_4, %c0_5] : memref<1x32xf32, #tpu.memory_space<vmem>>, vector<1x32xf32>
    %13 = vector.broadcast %12 : vector<1x32xf32> to vector<8x32xf32>
    %14 = arith.mulf %11, %13 : vector<8x32xf32>
    %c0_6 = arith.constant 0 : index
    %c0_7 = arith.constant 0 : index
    %15 = vector.load %arg6[%c0_6, %c0_7] : memref<32x96xf32, #tpu.memory_space<vmem>>, vector<32x96xf32>
    %cst_8 = arith.constant dense<0.000000e+00> : vector<8x96xf32>
    %16 = tpu.matmul %14, %15, %cst_8 {dimension_numbers = #tpu.dot_dimension_numbers<[1], [0], [0], [1], [0, 0, 1, 1], [], []>} : vector<8x32xf32>, vector<32x96xf32>, vector<8x96xf32> -> vector<8x96xf32>
    %17 = vector.extract_strided_slice %16 {offsets = [0, 0], sizes = [8, 16], strides = [1, 1]} : vector<8x96xf32> to vector<8x16xf32>
    %18 = vector.extract_strided_slice %16 {offsets = [0, 16], sizes = [8, 16], strides = [1, 1]} : vector<8x96xf32> to vector<8x16xf32>
    %19 = vector.extract_strided_slice %16 {offsets = [0, 32], sizes = [8, 16], strides = [1, 1]} : vector<8x96xf32> to vector<8x16xf32>
    %20 = vector.extract_strided_slice %16 {offsets = [0, 48], sizes = [8, 16], strides = [1, 1]} : vector<8x96xf32> to vector<8x16xf32>
    %21 = vector.extract_strided_slice %16 {offsets = [0, 64], sizes = [8, 32], strides = [1, 1]} : vector<8x96xf32> to vector<8x32xf32>
    %c0_9 = arith.constant 0 : index
    %c0_10 = arith.constant 0 : index
    %22 = vector.load %arg2[%c0_9, %c0_10] : memref<8x16xf32, #tpu.memory_space<vmem>>, vector<8x16xf32>
    %c0_11 = arith.constant 0 : index
    %c0_12 = arith.constant 0 : index
    %23 = vector.load %arg3[%c0_11, %c0_12] : memref<8x16xf32, #tpu.memory_space<vmem>>, vector<8x16xf32>
    %24 = arith.mulf %17, %22 : vector<8x16xf32>
    %25 = arith.mulf %18, %23 : vector<8x16xf32>
    %26 = arith.subf %24, %25 : vector<8x16xf32>
    %cst_13 = arith.constant 0.000000e+00 : f32
    %27 = vector.broadcast %cst_13 : f32 to vector<8x16xf32>
    %28 = arith.cmpf ogt, %26, %27 : vector<8x16xf32>
    %cst_14 = arith.constant 1.000000e+00 : f32
    %29 = vector.broadcast %cst_14 : f32 to vector<8x16xf32>
    %30 = arith.addf %26, %29 : vector<8x16xf32>
    %31 = math.exp %26 : vector<8x16xf32>
    %32 = arith.select %28, %30, %31 : vector<8x16xi1>, vector<8x16xf32>
    %33 = arith.mulf %18, %22 : vector<8x16xf32>
    %34 = arith.mulf %17, %23 : vector<8x16xf32>
    %35 = arith.addf %33, %34 : vector<8x16xf32>
    %cst_15 = arith.constant 0.000000e+00 : f32
    %36 = vector.broadcast %cst_15 : f32 to vector<8x16xf32>
    %37 = arith.cmpf ogt, %35, %36 : vector<8x16xf32>
    %cst_16 = arith.constant 1.000000e+00 : f32
    %38 = vector.broadcast %cst_16 : f32 to vector<8x16xf32>
    %39 = arith.addf %35, %38 : vector<8x16xf32>
    %40 = math.exp %35 : vector<8x16xf32>
    %41 = arith.select %37, %39, %40 : vector<8x16xi1>, vector<8x16xf32>
    %42 = arith.mulf %19, %22 : vector<8x16xf32>
    %43 = arith.mulf %20, %23 : vector<8x16xf32>
    %44 = arith.subf %42, %43 : vector<8x16xf32>
    %cst_17 = arith.constant 0.000000e+00 : f32
    %45 = vector.broadcast %cst_17 : f32 to vector<8x16xf32>
    %46 = arith.cmpf ogt, %44, %45 : vector<8x16xf32>
    %cst_18 = arith.constant 1.000000e+00 : f32
    %47 = vector.broadcast %cst_18 : f32 to vector<8x16xf32>
    %48 = arith.addf %44, %47 : vector<8x16xf32>
    %49 = math.exp %44 : vector<8x16xf32>
    %50 = arith.select %46, %48, %49 : vector<8x16xi1>, vector<8x16xf32>
    %51 = arith.mulf %20, %22 : vector<8x16xf32>
    %52 = arith.mulf %19, %23 : vector<8x16xf32>
    %53 = arith.addf %51, %52 : vector<8x16xf32>
    %cst_19 = arith.constant 0.000000e+00 : f32
    %54 = vector.broadcast %cst_19 : f32 to vector<8x16xf32>
    %55 = arith.cmpf ogt, %53, %54 : vector<8x16xf32>
    %cst_20 = arith.constant 1.000000e+00 : f32
    %56 = vector.broadcast %cst_20 : f32 to vector<8x16xf32>
    %57 = arith.addf %53, %56 : vector<8x16xf32>
    %58 = math.exp %53 : vector<8x16xf32>
    %59 = arith.select %55, %57, %58 : vector<8x16xi1>, vector<8x16xf32>
    %c0_21 = arith.constant 0 : index
    %c0_22 = arith.constant 0 : index
    %60 = vector.load %arg4[%c0_21, %c0_22] : memref<8x8xf32, #tpu.memory_space<vmem>>, vector<8x8xf32>
    %61 = vector.extract_strided_slice %32 {offsets = [0, 0], sizes = [8, 4], strides = [1, 1]} : vector<8x16xf32> to vector<8x4xf32>
    %62 = vector.extract_strided_slice %50 {offsets = [0, 0], sizes = [8, 4], strides = [1, 1]} : vector<8x16xf32> to vector<8x4xf32>
    %cst_23 = arith.constant dense<0.000000e+00> : vector<8x8xf32>
    %63 = tpu.matmul %61, %62, %cst_23 {dimension_numbers = #tpu.dot_dimension_numbers<[1], [1], [0], [0], [0, 0, 1, 0], [], []>} : vector<8x4xf32>, vector<8x4xf32>, vector<8x8xf32> -> vector<8x8xf32>
    %64 = vector.extract_strided_slice %41 {offsets = [0, 0], sizes = [8, 4], strides = [1, 1]} : vector<8x16xf32> to vector<8x4xf32>
    %65 = vector.extract_strided_slice %59 {offsets = [0, 0], sizes = [8, 4], strides = [1, 1]} : vector<8x16xf32> to vector<8x4xf32>
    %cst_24 = arith.constant dense<0.000000e+00> : vector<8x8xf32>
    %66 = tpu.matmul %64, %65, %cst_24 {dimension_numbers = #tpu.dot_dimension_numbers<[1], [1], [0], [0], [0, 0, 1, 0], [], []>} : vector<8x4xf32>, vector<8x4xf32>, vector<8x8xf32> -> vector<8x8xf32>
    %67 = arith.addf %63, %66 : vector<8x8xf32>
    %cst_25 = arith.constant 0.353553385 : f32
    %68 = vector.broadcast %cst_25 : f32 to vector<8x8xf32>
    %69 = arith.mulf %67, %68 : vector<8x8xf32>
    %70 = arith.mulf %69, %60 : vector<8x8xf32>
    %cst_26 = arith.constant dense<0.000000e+00> : vector<8xf32>
    %71 = vector.multi_reduction <add>, %70, %cst_26 [1] : vector<8x8xf32> to vector<8xf32>
    %72 = vector.shape_cast %71 : vector<8xf32> to vector<8x1xf32>
    %cst_27 = arith.constant 9.99999993E-9 : f32
    %73 = vector.broadcast %cst_27 : f32 to vector<8x1xf32>
    %74 = arith.addf %72, %73 : vector<8x1xf32>
    %75 = vector.broadcast %74 : vector<8x1xf32> to vector<8x8xf32>
    %76 = arith.divf %70, %75 : vector<8x8xf32>
    %77 = vector.extract_strided_slice %21 {offsets = [0, 0], sizes = [8, 8], strides = [1, 1]} : vector<8x32xf32> to vector<8x8xf32>
    %cst_28 = arith.constant dense<0.000000e+00> : vector<8x8xf32>
    %78 = tpu.matmul %76, %77, %cst_28 {dimension_numbers = #tpu.dot_dimension_numbers<[1], [0], [0], [1], [0, 0, 1, 1], [], []>} : vector<8x8xf32>, vector<8x8xf32>, vector<8x8xf32> -> vector<8x8xf32>
    %79 = vector.extract_strided_slice %32 {offsets = [0, 4], sizes = [8, 4], strides = [1, 1]} : vector<8x16xf32> to vector<8x4xf32>
    %80 = vector.extract_strided_slice %50 {offsets = [0, 4], sizes = [8, 4], strides = [1, 1]} : vector<8x16xf32> to vector<8x4xf32>
    %cst_29 = arith.constant dense<0.000000e+00> : vector<8x8xf32>
    %81 = tpu.matmul %79, %80, %cst_29 {dimension_numbers = #tpu.dot_dimension_numbers<[1], [1], [0], [0], [0, 0, 1, 0], [], []>} : vector<8x4xf32>, vector<8x4xf32>, vector<8x8xf32> -> vector<8x8xf32>
    %82 = vector.extract_strided_slice %41 {offsets = [0, 4], sizes = [8, 4], strides = [1, 1]} : vector<8x16xf32> to vector<8x4xf32>
    %83 = vector.extract_strided_slice %59 {offsets = [0, 4], sizes = [8, 4], strides = [1, 1]} : vector<8x16xf32> to vector<8x4xf32>
    %cst_30 = arith.constant dense<0.000000e+00> : vector<8x8xf32>
    %84 = tpu.matmul %82, %83, %cst_30 {dimension_numbers = #tpu.dot_dimension_numbers<[1], [1], [0], [0], [0, 0, 1, 0], [], []>} : vector<8x4xf32>, vector<8x4xf32>, vector<8x8xf32> -> vector<8x8xf32>
    %85 = arith.addf %81, %84 : vector<8x8xf32>
    %cst_31 = arith.constant 0.353553385 : f32
    %86 = vector.broadcast %cst_31 : f32 to vector<8x8xf32>
    %87 = arith.mulf %85, %86 : vector<8x8xf32>
    %88 = arith.mulf %87, %60 : vector<8x8xf32>
    %cst_32 = arith.constant dense<0.000000e+00> : vector<8xf32>
    %89 = vector.multi_reduction <add>, %88, %cst_32 [1] : vector<8x8xf32> to vector<8xf32>
    %90 = vector.shape_cast %89 : vector<8xf32> to vector<8x1xf32>
    %cst_33 = arith.constant 9.99999993E-9 : f32
    %91 = vector.broadcast %cst_33 : f32 to vector<8x1xf32>
    %92 = arith.addf %90, %91 : vector<8x1xf32>
    %93 = vector.broadcast %92 : vector<8x1xf32> to vector<8x8xf32>
    %94 = arith.divf %88, %93 : vector<8x8xf32>
    %95 = vector.extract_strided_slice %21 {offsets = [0, 8], sizes = [8, 8], strides = [1, 1]} : vector<8x32xf32> to vector<8x8xf32>
    %cst_34 = arith.constant dense<0.000000e+00> : vector<8x8xf32>
    %96 = tpu.matmul %94, %95, %cst_34 {dimension_numbers = #tpu.dot_dimension_numbers<[1], [0], [0], [1], [0, 0, 1, 1], [], []>} : vector<8x8xf32>, vector<8x8xf32>, vector<8x8xf32> -> vector<8x8xf32>
    %97 = vector.extract_strided_slice %32 {offsets = [0, 8], sizes = [8, 4], strides = [1, 1]} : vector<8x16xf32> to vector<8x4xf32>
    %98 = vector.extract_strided_slice %50 {offsets = [0, 8], sizes = [8, 4], strides = [1, 1]} : vector<8x16xf32> to vector<8x4xf32>
    %cst_35 = arith.constant dense<0.000000e+00> : vector<8x8xf32>
    %99 = tpu.matmul %97, %98, %cst_35 {dimension_numbers = #tpu.dot_dimension_numbers<[1], [1], [0], [0], [0, 0, 1, 0], [], []>} : vector<8x4xf32>, vector<8x4xf32>, vector<8x8xf32> -> vector<8x8xf32>
    %100 = vector.extract_strided_slice %41 {offsets = [0, 8], sizes = [8, 4], strides = [1, 1]} : vector<8x16xf32> to vector<8x4xf32>
    %101 = vector.extract_strided_slice %59 {offsets = [0, 8], sizes = [8, 4], strides = [1, 1]} : vector<8x16xf32> to vector<8x4xf32>
    %cst_36 = arith.constant dense<0.000000e+00> : vector<8x8xf32>
    %102 = tpu.matmul %100, %101, %cst_36 {dimension_numbers = #tpu.dot_dimension_numbers<[1], [1], [0], [0], [0, 0, 1, 0], [], []>} : vector<8x4xf32>, vector<8x4xf32>, vector<8x8xf32> -> vector<8x8xf32>
    %103 = arith.addf %99, %102 : vector<8x8xf32>
    %cst_37 = arith.constant 0.353553385 : f32
    %104 = vector.broadcast %cst_37 : f32 to vector<8x8xf32>
    %105 = arith.mulf %103, %104 : vector<8x8xf32>
    %106 = arith.mulf %105, %60 : vector<8x8xf32>
    %cst_38 = arith.constant dense<0.000000e+00> : vector<8xf32>
    %107 = vector.multi_reduction <add>, %106, %cst_38 [1] : vector<8x8xf32> to vector<8xf32>
    %108 = vector.shape_cast %107 : vector<8xf32> to vector<8x1xf32>
    %cst_39 = arith.constant 9.99999993E-9 : f32
    %109 = vector.broadcast %cst_39 : f32 to vector<8x1xf32>
    %110 = arith.addf %108, %109 : vector<8x1xf32>
    %111 = vector.broadcast %110 : vector<8x1xf32> to vector<8x8xf32>
    %112 = arith.divf %106, %111 : vector<8x8xf32>
    %113 = vector.extract_strided_slice %21 {offsets = [0, 16], sizes = [8, 8], strides = [1, 1]} : vector<8x32xf32> to vector<8x8xf32>
    %cst_40 = arith.constant dense<0.000000e+00> : vector<8x8xf32>
    %114 = tpu.matmul %112, %113, %cst_40 {dimension_numbers = #tpu.dot_dimension_numbers<[1], [0], [0], [1], [0, 0, 1, 1], [], []>} : vector<8x8xf32>, vector<8x8xf32>, vector<8x8xf32> -> vector<8x8xf32>
    %115 = vector.extract_strided_slice %32 {offsets = [0, 12], sizes = [8, 4], strides = [1, 1]} : vector<8x16xf32> to vector<8x4xf32>
    %116 = vector.extract_strided_slice %50 {offsets = [0, 12], sizes = [8, 4], strides = [1, 1]} : vector<8x16xf32> to vector<8x4xf32>
    %cst_41 = arith.constant dense<0.000000e+00> : vector<8x8xf32>
    %117 = tpu.matmul %115, %116, %cst_41 {dimension_numbers = #tpu.dot_dimension_numbers<[1], [1], [0], [0], [0, 0, 1, 0], [], []>} : vector<8x4xf32>, vector<8x4xf32>, vector<8x8xf32> -> vector<8x8xf32>
    %118 = vector.extract_strided_slice %41 {offsets = [0, 12], sizes = [8, 4], strides = [1, 1]} : vector<8x16xf32> to vector<8x4xf32>
    %119 = vector.extract_strided_slice %59 {offsets = [0, 12], sizes = [8, 4], strides = [1, 1]} : vector<8x16xf32> to vector<8x4xf32>
    %cst_42 = arith.constant dense<0.000000e+00> : vector<8x8xf32>
    %120 = tpu.matmul %118, %119, %cst_42 {dimension_numbers = #tpu.dot_dimension_numbers<[1], [1], [0], [0], [0, 0, 1, 0], [], []>} : vector<8x4xf32>, vector<8x4xf32>, vector<8x8xf32> -> vector<8x8xf32>
    %121 = arith.addf %117, %120 : vector<8x8xf32>
    %cst_43 = arith.constant 0.353553385 : f32
    %122 = vector.broadcast %cst_43 : f32 to vector<8x8xf32>
    %123 = arith.mulf %121, %122 : vector<8x8xf32>
    %124 = arith.mulf %123, %60 : vector<8x8xf32>
    %cst_44 = arith.constant dense<0.000000e+00> : vector<8xf32>
    %125 = vector.multi_reduction <add>, %124, %cst_44 [1] : vector<8x8xf32> to vector<8xf32>
    %126 = vector.shape_cast %125 : vector<8xf32> to vector<8x1xf32>
    %cst_45 = arith.constant 9.99999993E-9 : f32
    %127 = vector.broadcast %cst_45 : f32 to vector<8x1xf32>
    %128 = arith.addf %126, %127 : vector<8x1xf32>
    %129 = vector.broadcast %128 : vector<8x1xf32> to vector<8x8xf32>
    %130 = arith.divf %124, %129 : vector<8x8xf32>
    %131 = vector.extract_strided_slice %21 {offsets = [0, 24], sizes = [8, 8], strides = [1, 1]} : vector<8x32xf32> to vector<8x8xf32>
    %cst_46 = arith.constant dense<0.000000e+00> : vector<8x8xf32>
    %132 = tpu.matmul %130, %131, %cst_46 {dimension_numbers = #tpu.dot_dimension_numbers<[1], [0], [0], [1], [0, 0, 1, 1], [], []>} : vector<8x8xf32>, vector<8x8xf32>, vector<8x8xf32> -> vector<8x8xf32>
    %133 = tpu.concatenate %78, %96, %114, %132 in 1 : vector<8x8xf32>, vector<8x8xf32>, vector<8x8xf32>, vector<8x8xf32> -> vector<8x32xf32>
    %c0_47 = arith.constant 0 : index
    %c0_48 = arith.constant 0 : index
    %134 = vector.load %arg7[%c0_47, %c0_48] : memref<32x32xf32, #tpu.memory_space<vmem>>, vector<32x32xf32>
    %cst_49 = arith.constant dense<0.000000e+00> : vector<8x32xf32>
    %135 = tpu.matmul %133, %134, %cst_49 {dimension_numbers = #tpu.dot_dimension_numbers<[1], [0], [0], [1], [0, 0, 1, 1], [], []>} : vector<8x32xf32>, vector<32x32xf32>, vector<8x32xf32> -> vector<8x32xf32>
    %136 = arith.addf %1, %135 : vector<8x32xf32>
    %137 = arith.mulf %136, %136 : vector<8x32xf32>
    %cst_50 = arith.constant dense<0.000000e+00> : vector<8xf32>
    %138 = vector.multi_reduction <add>, %137, %cst_50 [1] : vector<8x32xf32> to vector<8xf32>
    %139 = vector.shape_cast %138 : vector<8xf32> to vector<8x1xf32>
    %cst_51 = arith.constant 3.200000e+01 : f32
    %140 = vector.broadcast %cst_51 : f32 to vector<8x1xf32>
    %141 = arith.divf %139, %140 : vector<8x1xf32>
    %cst_52 = arith.constant 9.99999974E-6 : f32
    %142 = vector.broadcast %cst_52 : f32 to vector<8x1xf32>
    %143 = arith.addf %141, %142 : vector<8x1xf32>
    %144 = math.rsqrt %143 : vector<8x1xf32>
    %145 = vector.broadcast %144 : vector<8x1xf32> to vector<8x32xf32>
    %146 = arith.mulf %136, %145 : vector<8x32xf32>
    %c0_53 = arith.constant 0 : index
    %c0_54 = arith.constant 0 : index
    %147 = vector.load %arg8[%c0_53, %c0_54] : memref<1x32xf32, #tpu.memory_space<vmem>>, vector<1x32xf32>
    %148 = vector.broadcast %147 : vector<1x32xf32> to vector<8x32xf32>
    %149 = arith.mulf %146, %148 : vector<8x32xf32>
    %c0_55 = arith.constant 0 : index
    %c0_56 = arith.constant 0 : index
    %150 = vector.load %arg9[%c0_55, %c0_56] : memref<32x128xf32, #tpu.memory_space<vmem>>, vector<32x128xf32>
    %cst_57 = arith.constant dense<0.000000e+00> : vector<8x128xf32>
    %151 = tpu.matmul %149, %150, %cst_57 {dimension_numbers = #tpu.dot_dimension_numbers<[1], [0], [0], [1], [0, 0, 1, 1], [], []>} : vector<8x32xf32>, vector<32x128xf32>, vector<8x128xf32> -> vector<8x128xf32>
    %152 = vector.extract_strided_slice %151 {offsets = [0, 0], sizes = [8, 64], strides = [1, 1]} : vector<8x128xf32> to vector<8x64xf32>
    %153 = vector.extract_strided_slice %151 {offsets = [0, 64], sizes = [8, 64], strides = [1, 1]} : vector<8x128xf32> to vector<8x64xf32>
    %154 = arith.negf %152 : vector<8x64xf32>
    %155 = math.exp %154 : vector<8x64xf32>
    %cst_58 = arith.constant 1.000000e+00 : f32
    %156 = vector.broadcast %cst_58 : f32 to vector<8x64xf32>
    %157 = arith.addf %156, %155 : vector<8x64xf32>
    %158 = arith.divf %156, %157 : vector<8x64xf32>
    %159 = arith.mulf %152, %158 : vector<8x64xf32>
    %160 = arith.mulf %159, %153 : vector<8x64xf32>
    %c0_59 = arith.constant 0 : index
    %c0_60 = arith.constant 0 : index
    %161 = vector.load %arg10[%c0_59, %c0_60] : memref<64x32xf32, #tpu.memory_space<vmem>>, vector<64x32xf32>
    %cst_61 = arith.constant dense<0.000000e+00> : vector<8x32xf32>
    %162 = tpu.matmul %160, %161, %cst_61 {dimension_numbers = #tpu.dot_dimension_numbers<[1], [0], [0], [1], [0, 0, 1, 1], [], []>} : vector<8x64xf32>, vector<64x32xf32>, vector<8x32xf32> -> vector<8x32xf32>
    %163 = arith.addf %136, %162 : vector<8x32xf32>
    %c0_62 = arith.constant 0 : index
    %c0_63 = arith.constant 0 : index
    %c0_64 = arith.constant 0 : index
    %164 = vector.load %arg11[%c0_62, %c0_63, %c0_64] : memref<1x8x32xf32, #tpu.memory_space<vmem>>, vector<1x8x32xf32>
    %165 = vector.shape_cast %164 : vector<1x8x32xf32> to vector<8x32xf32>
    %166 = vector.shape_cast %163 : vector<8x32xf32> to vector<1x8x32xf32>
    tpu.vector_store %arg11[%c0_62, %c0_63, %c0_64], %166 {strides = array<i32>} : memref<1x8x32xf32, #tpu.memory_space<vmem>>, vector<1x8x32xf32>,
    return
  }
  func.func @transform_0(%arg0: i32) -> (i32, i32, i32) {
    %c0_i32 = arith.constant 0 : i32
    %c0_i32_0 = arith.constant 0 : i32
    %c0_i32_1 = arith.constant 0 : i32
    return %arg0, %c0_i32, %c0_i32_0 : i32, i32, i32
  }
  func.func @transform_1(%arg0: i32) -> (i32, i32) {
    %c0_i32 = arith.constant 0 : i32
    %c0_i32_0 = arith.constant 0 : i32
    %c0_i32_1 = arith.constant 0 : i32
    return %c0_i32, %c0_i32_0 : i32, i32
  }
  func.func @transform_2(%arg0: i32) -> (i32, i32) {
    %c0_i32 = arith.constant 0 : i32
    %c0_i32_0 = arith.constant 0 : i32
    %c0_i32_1 = arith.constant 0 : i32
    return %c0_i32, %c0_i32_0 : i32, i32
  }
  func.func @transform_3(%arg0: i32) -> (i32, i32) {
    %c0_i32 = arith.constant 0 : i32
    %c0_i32_0 = arith.constant 0 : i32
    %c0_i32_1 = arith.constant 0 : i32
    return %c0_i32, %c0_i32_0 : i32, i32
  }
  func.func @transform_4(%arg0: i32) -> (i32, i32) {
    %c0_i32 = arith.constant 0 : i32
    %c0_i32_0 = arith.constant 0 : i32
    %c0_i32_1 = arith.constant 0 : i32
    return %c0_i32, %c0_i32_0 : i32, i32
  }
  func.func @transform_5(%arg0: i32) -> (i32, i32) {
    %c0_i32 = arith.constant 0 : i32
    %c0_i32_0 = arith.constant 0 : i32
    %c0_i32_1 = arith.constant 0 : i32
    return %c0_i32, %c0_i32_0 : i32, i32
  }
  func.func @transform_6(%arg0: i32) -> (i32, i32) {
    %c0_i32 = arith.constant 0 : i32
    %c0_i32_0 = arith.constant 0 : i32
    %c0_i32_1 = arith.constant 0 : i32
    return %c0_i32, %c0_i32_0 : i32, i32
  }
  func.func @transform_7(%arg0: i32) -> (i32, i32) {
    %c0_i32 = arith.constant 0 : i32
    %c0_i32_0 = arith.constant 0 : i32
    %c0_i32_1 = arith.constant 0 : i32
    return %c0_i32, %c0_i32_0 : i32, i32
  }
  func.func @transform_8(%arg0: i32) -> (i32, i32) {
    %c0_i32 = arith.constant 0 : i32
    %c0_i32_0 = arith.constant 0 : i32
    %c0_i32_1 = arith.constant 0 : i32
    return %c0_i32, %c0_i32_0 : i32, i32
  }
  func.func @transform_9(%arg0: i32) -> (i32, i32) {
    %c0_i32 = arith.constant 0 : i32
    %c0_i32_0 = arith.constant 0 : i32
    %c0_i32_1 = arith.constant 0 : i32
    return %c0_i32, %c0_i32_0 : i32, i32
  }
  func.func @transform_10(%arg0: i32) -> (i32, i32, i32) {
    %c0_i32 = arith.constant 0 : i32
    %c0_i32_0 = arith.constant 0 : i32
    %c0_i32_1 = arith.constant 0 : i32
    return %arg0, %c0_i32, %c0_i32_0 : i32, i32, i32
  }
}

</mosaic_0001>

<bundles_post_ra>
// kernel: block_forward.1
= control target key start
LH: loop header
LB: loop body
LE: loop exit
PB: predicated region body
PF: predicated region fallthrough
CT: control target
= control target key end

     0   :  { %15 = vsyncpa [#allocation3], 0  ;;  %s2634_s0 = inlined_call_operand.vmem [shape: f32[2,8,32], index: 0, kind: input, shape index: {}]   ;;  %s2635_s1 = inlined_call_operand.vmem [shape: f32[8,16], index: 1, kind: input, shape index: {}]   ;;  %s2636_s2 = inlined_call_operand.vmem [shape: f32[8,16], index: 2, kind: input, shape index: {}]   ;;  %s2637_s3 = inlined_call_operand.vmem [shape: f32[8,8], index: 3, kind: input, shape index: {}]   ;;  %s2638_s4 = inlined_call_operand.vmem [shape: f32[1,32], index: 4, kind: input, shape index: {}]   ;;  %s2639_s5 = inlined_call_operand.vmem [shape: f32[32,96], index: 5, kind: input, shape index: {}]   ;;  %s2640_s6 = inlined_call_operand.vmem [shape: f32[32,32], index: 6, kind: input, shape index: {}]   ;;  %s2641_s7 = inlined_call_operand.vmem [shape: f32[1,32], index: 7, kind: input, shape index: {}]   ;;  %s2642_s8 = inlined_call_operand.vmem [shape: f32[32,128], index: 8, kind: input, shape index: {}]   ;;  %s2643_s9 = inlined_call_operand.vmem [shape: f32[64,32], index: 9, kind: input, shape index: {}]   ;;  %s2644_s10 = inlined_call_operand.hbm [shape: f32[2,8,32], index: 10, kind: output, shape index: {}]  }
   0x1   :  { %17 = vsyncpa [#allocation3 + $0x1], 0  ;;  %s2314_s13 = smov 0   ;;  %s2316_s14 = smov 0  }
   0x2   :  { %s2318_s15 = smov 0   ;;  %s2320_s16 = smov 0  }
   0x3 LB: > { %s2335_s17 = sadd.s32 4294967295, %s2230_s16   ;;  %s1844_s18 = sadd.s32 4294967294, %s2230_s16   ;;  %s2230_s16 = sphi %s2320_s16, %s2650_s16   ;;  %s2226_s15 = sphi %s2318_s15, %s2649_s15   ;;  %s2222_s14 = sphi %s2316_s14, %s2648_s14   ;;  %s2218_s13 = sphi %s2314_s13, %s2647_s13  }
   0x4   : > { %s2339_s19 = sadd.s32 1, %s2230_s16   ;;  %s245_s20 = sadd.s32 1, %s2226_s15 }
   0x5   : > { %s242_s21 = ssub.s32 %s2230_s16, %s2339_s19  ;;  %p255_p0 = scmp.ne.s32.totalorder %s2226_s15, %s2222_s14 }
   0x6   : > { %p243_p1 = scmp.eq.s32.totalorder %s242_s21, 0  ;;  %p256_p2 = scmp.eq.s32.totalorder %s2335_s17, 1 }
   0x7   : > { %p261_p3 = scmp.ne.s32.totalorder %s2222_s14, %s2218_s13  ;;  %p262_p4 = scmp.eq.s32.totalorder %s1844_s18, 1 }
   0x8   : > { %s2350_s22 = scalar_select %p243_p1, %s2226_s15, %s245_s20  }
   0x9   : > { %p2352_p5 = por %p256_p2, %p255_p0  ;;  %p2356_p6 = por %p262_p4, %p261_p3 }
   0xa   : > { %p1847_p7 = scmp.ge.s32.totalorder %s2230_s16, 1  ;;  %p314_p8 = scmp.lt.s32.totalorder %s2230_s16, 3 }
   0xc   : > { %p315_p9 = pnand %p1847_p7, %p314_p8 }
   0xd   : > { %p351_p10 = scmp.lt.s32.totalorder (!%p315_p9), %s2335_s17, 1  ;;  %vm357_vm0 = vcmask (!%p315_p9), 261120   ;;  %v374_v3 = vld [vmem:[%s2639_s5] sm:$0xff] (!%p315_p9)  ;;  %v375_v4 = vld [vmem:[%s2639_s5 + $0x8] sm:$0xff] (!%p315_p9)  ;;  %v376_v5 = vld [vmem:[%s2639_s5 + $0x10] sm:$0xff] (!%p315_p9)  ;;  %v2232_v6 = vmov (!%p315_p9), 0.0|0.0  }
   0xe   : > { %318 = sbr.rel (%p315_p9) target bundleno = 3084 (0xc0c), region = 60  ;;  %2041 = vmatprep.subr.bf16.mxu1 (!%p315_p9), %v2232_v6  ;;  %v2042_v7 = vpack.c.bf16 (!%p315_p9), %v375_v4, %v374_v3  ;;  %v377_v8 = vld [vmem:[%s2639_s5 + $0x18] sm:$0xff] (!%p315_p9)  ;;  %vm2233_vm1 = vmmov (!%p315_p9), 0   ;;  %v2234_v9 = vmov (!%p315_p9), 0.0   ;;  %v452_v11 = vld [vmem:[%s2636_s2] sm:$0xff] (!%p315_p9)  ;;  %s2236_s30 = smov (!%p315_p9), 32  }
   0xf   : > { %1937 = vmatprep.mubr.msk.f32.mxu1 (!%p315_p9), %vm2233_vm1, %v2234_v9  ;;  %1950 = vmatprep.subr.mxu0 (!%p315_p9), %v2234_v9  ;;  %v2045_v10 = vpack.c.bf16 (!%p315_p9), %v377_v8, %v376_v5  ;;  %s2237_s11 = smov (!%p315_p9), 16   ;;  %v451_v12 = vld [vmem:[%s2635_s1] sm:$0xff] (!%p315_p9)  ;;  %s2240_s27 = smov (!%p315_p9), 76   ;;  %vm528_vm6 = vcmask (!%p315_p9), 31744   ;;  %vm683_vm7 = vcmask (!%p315_p9), 64512   ;;  %vm1500_vm8 = vcmask (!%p315_p9), 130048  }
  0x10   : > { %1952 = vmatprep.mubr.msk.f32.mxu0 (!%p315_p9), %vm2233_vm1, %v2234_v9  ;;  %2043 = vmatpush3.bf16.msra.mxu1 (!%p315_p9), %v2042_v7  ;;  %v1850_v17 = vld [vmem:[%s2638_s4] ss:$0 sm:$0xff] (!%p315_p9)  ;;  %s2241_s28 = smov (!%p315_p9), 96   ;;  %s2243_s12 = smov (!%p315_p9), 108   ;;  %vm1502_vm9 = vcmask (!%p315_p9), 195584   ;;  %vm1695_vm10 = vcmask (!%p315_p9), 523264  }
  0x11   : > { %2044 = vmatprep.subr.bf16.mxu1 (!%p315_p9), %v2232_v6  ;;  %s2244_s18 = smov (!%p315_p9), 124   ;;  %v2459_v5 = vld [vmem:[%s2637_s3] sm:$0xff] (!%p315_p9)  ;;  %s2252_s20 = smov (!%p315_p9), 100  }
  0x12   : > { %s2253_s21 = smov (!%p315_p9), 84  }
  0x14   : > { %2046 = vmatpush3.bf16.msra.mxu1 (!%p315_p9), %v2045_v10 }
  0x15   : > { %s352_s25 = scalar_select %p351_p10, %s2335_s17, 1  ;;  %1940 = vmatprep.subr.mxu1 %v2234_v9 }
  0x17   : > { %s1849_s26 = sshll.u32 %s352_s25, 3  ;;  %s2238_s25 = smov 112  }
  0x18   : > { %s354_s29 = scalar_lea.vmem %s2634_s0, %s1849_s26  ;;  %s2239_s26 = smov 80  }
  0x19   : > { %v2367_v0 = vld [vmem:[%s354_s29] sm:$0xff]  ;;  %s2235_s29 = smov 48  }
  0x1a   : > { %v356_v1 = vmul.f32 %v2367_v0, %v2367_v0  ;;  %489 = vrot.lane.b32.xlu1 %v452_v11, %s2235_s29 }
  0x1c   : > { %v358_v2 = vsel %vm357_vm0, %v356_v1, 0.0 }
  0x1d   : > { %359 = vadd.xlane.f32.xlu0 %v358_v2 }
  0x1e   : > { %455 = vrot.lane.b32.xlu1 %v452_v11, %s2237_s11 }
  0x22   : > { %503 = vrot.lane.b32.xlu1 %v451_v12, %s2235_s29 }
  0x26   : > { %470 = vrot.lane.b32.xlu1 %v451_v12, %s2237_s11 }
  0x33   : > { %507 = vrot.lane.b32.xlu0 %v452_v11, %s2236_s30 }
  0x8c   : > { %v490_v21 = vpop.permute.xlu1 %489 }
  0x90   : > { %v456_v27 = vpop.permute.xlu1 %455 }
  0x94   : > { %v504_v29 = vpop.permute.xlu1 %503 }
  0x98   : > { %v471_v30 = vpop.permute.xlu1 %470 }
  0xaa   : > { %v360_v13 = vpop.xlane.xlu0 %359 }
  0xab   : > { %v362_v14 = vmul.f32 0.03125, %v360_v13 }
  0xad   : > { %v363_v15 = vadd.f32 1e-05, %v362_v14 }
  0xae   : > { %v508_v20 = vpop.permute.xlu0 %507 }
  0xaf   : > { %2144 = vrsqrt.f32 %v363_v15 }
  0xb9   : > { %v2145_v16 = vpop.eup %2144 }
  0xba   : > { %v365_v18 = vmul.f32 %v2145_v16, %v2367_v0 }
  0xbc   : > { %v373_v19 = vmul.f32 %v1850_v17, %v365_v18 }
  0xbe   : > { %1938 = vmatmul.mubr.msk.f32.vlgmr.msra.gmra.mrb[0].mxu1 %vm357_vm0, %v373_v19 }
  0xbf   : > { %1942 = vmatprep.mubr.msk.f32.mxu1 %vm2233_vm1, %v2234_v9 }
 0x191   : > { %v2409_v22 = vpop.f32.mrb[0].mxu1 }
 0x192   : > { %v510_v23 = vmul.f32 %v508_v20, %v2409_v22  ;;  %v1939_v24 = vpop.f32.mrb[1].mxu1  ;;  %v492_v25 = vmul.f32 %v490_v21, %v2409_v22  ;;  %v474_v26 = vmul.f32 %v452_v11, %v2409_v22  ;;  %v458_v28 = vmul.f32 %v456_v27, %v2409_v22 }
 0x193   : > { %v506_v31 = vmul.f32 %v504_v29, %v2409_v22  ;;  %v473_v35 = vmul.f32 %v471_v30, %v2409_v22  ;;  %v453_v43 = vmul.f32 %v451_v12, %v2409_v22 }
 0x194   : > { %494 = vrot.lane.b32.xlu0 %v492_v25, %s2238_s25  ;;  %512 = vrot.lane.b32.xlu1 %v510_v23, %s2237_s11 }
 0x198   : > { %476 = vrot.lane.b32.xlu1 %v474_v26, %s2237_s11 }
 0x19c   : > { %485 = vrot.lane.b32.xlu1 %v451_v12, %s2236_s30  ;;  %s2242_s30 = smov 92  }
 0x1a0   : > { %460 = vrot.lane.b32.xlu1 %v458_v28, %s2238_s25 }
 0x206   : > { %v513_v32 = vpop.permute.xlu1 %512  ;;  %v495_v41 = vpop.permute.xlu0 %494 }
 0x207   : > { %v515_v33 = vadd.f32 %v513_v32, %v506_v31 }
 0x209   : > { %v518_v34 = vmul.f32 1.442695, %v515_v33  ;;  %v517_v47 = vadd.f32 1.0, %v515_v33  ;;  %vm516_vm2 = vcmp.gt.f32.partialorder %v515_v33, 0.0 }
 0x20a   : > { %v477_v36 = vpop.permute.xlu1 %476 }
 0x20b   : > { %2146 = vpow2.f32 %v518_v34  ;;  %v479_v37 = vadd.f32 %v477_v36, %v473_v35 }
 0x20d   : > { %v482_v38 = vmul.f32 1.442695, %v479_v37  ;;  %v481_v51 = vadd.f32 1.0, %v479_v37  ;;  %vm480_vm3 = vcmp.gt.f32.partialorder %v479_v37, 0.0 }
 0x20e   : > { %v486_v39 = vpop.permute.xlu1 %485 }
 0x20f   : > { %2148 = vpow2.f32 %v482_v38  ;;  %v488_v40 = vmul.f32 %v486_v39, %v2409_v22 }
 0x211   : > { %v497_v42 = vsub.f32 %v488_v40, %v495_v41 }
 0x212   : > { %v461_v44 = vpop.permute.xlu1 %460 }
 0x213   : > { %v500_v45 = vmul.f32 1.442695, %v497_v42  ;;  %v463_v46 = vsub.f32 %v453_v43, %v461_v44  ;;  %v499_v54 = vadd.f32 1.0, %v497_v42  ;;  %vm498_vm4 = vcmp.gt.f32.partialorder %v497_v42, 0.0 }
 0x215   : > { %v2147_v48 = vpop.eup %2146  ;;  %2150 = vpow2.f32 %v500_v45  ;;  %v466_v50 = vmul.f32 1.442695, %v463_v46  ;;  %v465_v58 = vadd.f32 1.0, %v463_v46  ;;  %vm464_vm5 = vcmp.gt.f32.partialorder %v463_v46, 0.0 }
 0x216   : > { %v2423_v49 = vsel %vm516_vm2, %v517_v47, %v2147_v48 }
 0x217   : > { %526 = vrot.lane.b32.xlu0 %v2423_v49, %s2239_s26  ;;  %2152 = vpow2.f32 %v466_v50  ;;  %s2246_s26 = smov 72  }
 0x219   : > { %v2149_v52 = vpop.eup %2148 }
 0x21a   : > { %v2426_v53 = vsel %vm480_vm3, %v481_v51, %v2149_v52 }
 0x21b   : > { %523 = vrot.lane.b32.xlu1 %v2426_v53, %s2238_s25  ;;  %s2245_s25 = smov 56  }
 0x21f   : > { %v2151_v55 = vpop.eup %2150  ;;  %769 = vrot.lane.b32.xlu1 %v2423_v49, %s2240_s27  ;;  %s2247_s27 = smov 88  }
 0x220   : > { %v2431_v56 = vsel %vm498_vm4, %v499_v54, %v2151_v55 }
 0x221   : > { %604 = vrot.lane.b32.xlu0 %v2431_v56, %s2241_s28  ;;  %v2153_v57 = vpop.eup %2152  ;;  %s2248_s28 = smov 64  }
 0x222   : > { %v468_v59 = vsel %vm464_vm5, %v465_v58, %v2153_v57 }
 0x223   : > { %847 = vrot.lane.b32.xlu1 %v2431_v56, %s2242_s30  ;;  %s2249_s30 = smov 104  }
 0x225   : > { %767 = vrot.lane.b32.xlu0 %v2426_v53, %s2243_s12  ;;  %s2250_s12 = smov 120  }
 0x229   : > { %845 = vrot.lane.b32.xlu0 %v468_v59, %s2244_s18  ;;  %s2251_s18 = smov 68  }
 0x289   : > { %v527_v60 = vpop.permute.xlu0 %526 }
 0x28a   : > { %1941 = vmatpush3.xpose.msk.msra.mxu1 %vm528_vm6, %v527_v60 }
 0x28b   : > { %1945 = vmatprep.subr.mxu1 %v2234_v9 }
 0x28d   : > { %v524_v61 = vpop.permute.xlu1 %523 }
 0x28e   : > { %1943 = vmatmul.mubr.msk.f32.vlgmr.msra.gmra.mrb[2].mxu1 %vm528_vm6, %v524_v61  ;;  %v1504_v61 = vld [vmem:[%s2640_s6] sm:$0xff] }
 0x28f   : > { %1947 = vmatprep.mubr.msk.f32.mxu1 %vm2233_vm1, %v2234_v9 }
 0x291   : > { %v770_v63 = vpop.permute.xlu1 %769 }
 0x293   : > { %v605_v62 = vpop.permute.xlu0 %604 }
 0x294   : > { %1946 = vmatpush3.xpose.msk.msra.mxu1 %vm528_vm6, %v605_v62  ;;  %v1505_v62 = vld [vmem:[%s2640_s6 + $0x8] sm:$0xff] }
 0x295   : > { %1955 = vmatprep.subr.mxu1 %v2234_v9  ;;  %v848_v2 = vpop.permute.xlu1 %847 }
 0x297   : > { %1948 = vmatmul.mubr.msk.f32.vlgmr.msra.gmra.mrb[2].mxu1 %vm528_vm6, %v468_v59  ;;  %v768_v1 = vpop.permute.xlu0 %767 }
 0x298   : > { %1956 = vmatpush3.xpose.msk.msra.mxu1 %vm528_vm6, %v770_v63  ;;  %1957 = vmatprep.mubr.msk.f32.mxu1 %vm2233_vm1, %v2234_v9  ;;  %v1506_v63 = vld [vmem:[%s2640_s6 + $0x10] sm:$0xff] }
 0x299   : > { %1960 = vmatprep.subr.mxu1 %v2234_v9 }
 0x29b   : > { %1958 = vmatmul.mubr.msk.f32.vlgmr.msra.gmra.mrb[4].mxu1 %vm528_vm6, %v768_v1  ;;  %v846_v3 = vpop.permute.xlu0 %845  ;;  %v2048_v1 = vpack.c.bf16 %v1505_v62, %v1504_v61 }
 0x29c   : > { %1961 = vmatpush3.xpose.msk.msra.mxu1 %vm528_vm6, %v848_v2  ;;  %1962 = vmatprep.mubr.msk.f32.mxu1 %vm2233_vm1, %v2234_v9  ;;  %v1507_v2 = vld [vmem:[%s2640_s6 + $0x18] sm:$0xff] }
 0x29d   : > { %1980 = vmatprep.subr.mxu1 %v2234_v9 }
 0x2a3   : > { %1963 = vmatmul.mubr.msk.f32.vlgmr.msra.gmra.mrb[4].mxu1 %vm528_vm6, %v846_v3  ;;  %v2051_v3 = vpack.c.bf16 %v1507_v2, %v1506_v63 }
 0x2a4   : > { %1982 = vmatprep.mubr.msk.f32.mxu1 %vm2233_vm1, %v2234_v9 }
 0x36a   : > { %v677_v4 = vpop.f32.mrb[2].mxu1 }
 0x36b   : > { %v681_v7 = vmul.f32 0.35355338, %v677_v4  ;;  %v1949_v8 = vpop.f32.mrb[3].mxu1 }
 0x36d   : > { %v682_v10 = vmul.f32 %v681_v7, %v2459_v5 }
 0x36f   : > { %v684_v11 = vsel %vm683_vm7, %v682_v10, 0.0 }
 0x370   : > { %685 = vadd.xlane.f32.xlu1 %v684_v11 }
 0x376   : > { %v919_v12 = vpop.f32.mrb[4].mxu1 }
 0x377   : > { %v923_v13 = vmul.f32 0.35355338, %v919_v12  ;;  %v1964_v14 = vpop.f32.mrb[5].mxu1 }
 0x379   : > { %v924_v15 = vmul.f32 %v923_v13, %v2459_v5 }
 0x37b   : > { %v925_v16 = vsel %vm683_vm7, %v924_v15, 0.0 }
 0x37c   : > { %926 = vadd.xlane.f32.xlu0 %v925_v16 }
 0x381   : > { %931 = vrot.lane.b32.xlu1 %v2409_v22, %s2245_s25  ;;  %s2254_s25 = smov 116  }
 0x385   : > { %1009 = vrot.lane.b32.xlu1 %v2423_v49, %s2246_s26  ;;  %s2256_s26 = smov 8  }
 0x389   : > { %1087 = vrot.lane.b32.xlu1 %v2431_v56, %s2247_s27 }
 0x392   : > { %691 = vrot.lane.b32.xlu0 %v2409_v22, %s2248_s28 }
 0x396   : > { %1007 = vrot.lane.b32.xlu0 %v2426_v53, %s2249_s30 }
 0x39a   : > { %1085 = vrot.lane.b32.xlu0 %v468_v59, %s2250_s12 }
 0x39e   : > { %1171 = vrot.lane.b32.xlu0 %v2409_v22, %s2235_s29  ;;  %s2255_s29 = smov 40  }
 0x3a2   : > { %1249 = vrot.lane.b32.xlu0 %v2423_v49, %s2251_s18 }
 0x3a6   : > { %1247 = vrot.lane.b32.xlu0 %v2426_v53, %s2252_s20  ;;  %s348_s20 = sand.u32 1, %s2222_s14  }
 0x3a7   : > { %s1772_s30 = scalar_lea.sflag [#allocation3], %s348_s20 }
 0x3aa   : > { %1327 = vrot.lane.b32.xlu0 %v2431_v56, %s2253_s21  ;;  %s1848_s21 = sshll.u32 %s348_s20, 3 }
 0x3ae   : > { %1325 = vrot.lane.b32.xlu0 %v468_v59, %s2254_s25  ;;  %s1878_s25 = sshll.u32 %s2335_s17, 7  ;;  %s2258_s17 = smov [#allocation2]  }
 0x3af   : > { %s2591_s27 = scalar_lea.hbm %s2644_s10, %s1878_s25  ;;  %s2172_s18 = sshll.u32 %s2258_s17, 4  ;;  %s2173_s18 = int_to_ptr.vmem [resolvable:$false] %s2172_s18 }
 0x3fd   : > { %v686_v17 = vpop.xlane.xlu1 %685 }
 0x3fe   : > { %v687_v18 = vadd.f32 1e-08, %v686_v17 }
 0x400   : > { %2154 = vrcp.f32 %v687_v18 }
 0x401   : > { %v932_v25 = vpop.permute.xlu1 %931 }
 0x405   : > { %v1010_v29 = vpop.permute.xlu1 %1009 }
 0x409   : > { %v927_v19 = vpop.xlane.xlu0 %926  ;;  %v1088_v32 = vpop.permute.xlu1 %1087 }
 0x40a   : > { %v2155_v20 = vpop.eup %2154  ;;  %v928_v21 = vadd.f32 1e-08, %v927_v19  ;;  %v1598_v19 = vld [vmem:[%s2642_s8] sm:$0xff] }
 0x40b   : > { %v689_v24 = vmul.f32 %v2155_v20, %v682_v10  ;;  %v1599_v20 = vld [vmem:[%s2642_s8 + $0x8] sm:$0xff] }
 0x40c   : > { %2156 = vrcp.f32 %v928_v21  ;;  %v2054_v21 = vpack.c.bf16 %v1599_v20, %v1598_v19 }
 0x40d   : > { %v692_v23 = vpop.permute.xlu0 %691 }
 0x40e   : > { %1951 = vmatpush3.msra.mxu0 %v692_v23 }
 0x40f   : > { %1953 = vmatmul.mubr.msk.f32.vlgmr.msra.gmra.mrb[0].mxu0 %vm683_vm7, %v689_v24  ;;  %1965 = vmatprep.subr.mxu0 %v2234_v9 }
 0x410   : > { %1966 = vmatpush3.msra.mxu0 %v932_v25  ;;  %1967 = vmatprep.mubr.msk.f32.mxu0 %vm2233_vm1, %v2234_v9 }
 0x411   : > { %v1008_v26 = vpop.permute.xlu0 %1007  ;;  %1970 = vmatprep.subr.mxu0 %v2234_v9 }
 0x415   : > { %v1086_v27 = vpop.permute.xlu0 %1085 }
 0x416   : > { %v2157_v28 = vpop.eup %2156 }
 0x417   : > { %v930_v30 = vmul.f32 %v2157_v28, %v924_v15  ;;  %v1873_v28 = vld [vmem:[%s2641_s7] ss:$0 sm:$0xff] }
 0x419   : > { %1968 = vmatmul.mubr.msk.f32.vlgmr.msra.gmra.mrb[2].mxu0 %vm683_vm7, %v930_v30  ;;  %v1172_v31 = vpop.permute.xlu0 %1171 }
 0x41a   : > { %1971 = vmatpush3.xpose.msk.msra.mxu0 %vm528_vm6, %v1010_v29  ;;  %1981 = vmatpush3.msra.mxu1 %v1172_v31  ;;  %v1687_v31 = vld [vmem:[%s2643_s9] sm:$0xff] }
 0x41b   : > { %1972 = vmatprep.mubr.msk.f32.mxu0 %vm2233_vm1, %v2234_v9  ;;  %1975 = vmatprep.subr.mxu0 %v2234_v9 }
 0x41c   : > { %1985 = vmatprep.subr.mxu1 %v2234_v9 }
 0x41d   : > { %1973 = vmatmul.mubr.msk.f32.vlgmr.msra.gmra.mrb[4].mxu0 %vm528_vm6, %v1008_v26  ;;  %v1250_v45 = vpop.permute.xlu0 %1249 }
 0x41e   : > { %1976 = vmatpush3.xpose.msk.msra.mxu0 %vm528_vm6, %v1088_v32  ;;  %1977 = vmatprep.mubr.msk.f32.mxu0 %vm2233_vm1, %v2234_v9  ;;  %v1688_v32 = vld [vmem:[%s2643_s9 + $0x8] sm:$0xff] }
 0x41f   : > { %1995 = vmatprep.subr.mxu0 %v2234_v9 }
 0x421   : > { %v1248_v47 = vpop.permute.xlu0 %1247 }
 0x425   : > { %1978 = vmatmul.mubr.msk.f32.vlgmr.msra.gmra.mrb[4].mxu0 %vm528_vm6, %v1086_v27 }
 0x426   : > { %1997 = vmatprep.mubr.msk.f32.mxu0 %vm2233_vm1, %v2234_v9 }
 0x4e2   : > { %v2495_v33 = vpop.f32.mrb[0].mxu0 }
 0x4e3   : > { %v1954_v34 = vpop.f32.mrb[1].mxu0 }
 0x4e4   : > { %v2060_v34 = vpack.c.bf16 %v1688_v32, %v1687_v31 }
 0x4ec   : > { %v1003_v35 = vpop.f32.mrb[2].mxu0 }
 0x4ed   : > { %v1969_v36 = vpop.f32.mrb[3].mxu0 }
 0x4f8   : > { %v1159_v37 = vpop.f32.mrb[4].mxu0 }
 0x4f9   : > { %v1163_v38 = vmul.f32 0.35355338, %v1159_v37  ;;  %v1979_v39 = vpop.f32.mrb[5].mxu0  ;;  %v1691_v37 = vld [vmem:[%s2643_s9 + $0x20] sm:$0xff] }
 0x4fb   : > { %v1164_v40 = vmul.f32 %v1163_v38, %v2459_v5  ;;  %v1692_v38 = vld [vmem:[%s2643_s9 + $0x28] sm:$0xff] }
 0x4fc   : > { %v2066_v39 = vpack.c.bf16 %v1692_v38, %v1691_v37 }
 0x4fd   : > { %v1165_v41 = vsel %vm683_vm7, %v1164_v40, 0.0 }
 0x4fe   : > { %1166 = vadd.xlane.f32.xlu1 %v1165_v41  ;;  %v1694_v41 = vld [vmem:[%s2643_s9 + $0x38] sm:$0xff] }
 0x50f   : > { %1411 = vrot.lane.b32.xlu1 %v2409_v22, %s2255_s29  ;;  %v1328_v22 = vpop.permute.xlu0 %1327  ;;  %s2257_s29 = smov 24  }
 0x513   : > { %v1326_v49 = vpop.permute.xlu0 %1325 }
 0x58b   : > { %v1167_v42 = vpop.xlane.xlu1 %1166 }
 0x58c   : > { %v1168_v43 = vadd.f32 1e-08, %v1167_v42 }
 0x58e   : > { %2158 = vrcp.f32 %v1168_v43 }
 0x58f   : > { %v1412_v44 = vpop.permute.xlu1 %1411 }
 0x590   : > { %1996 = vmatpush3.msra.mxu0 %v1412_v44 }
 0x591   : > { %2047 = vmatprep.subr.bf16.mxu0 %v2232_v6 }
 0x598   : > { %v2159_v46 = vpop.eup %2158 }
 0x599   : > { %v1170_v48 = vmul.f32 %v2159_v46, %v1164_v40  ;;  %v1693_v40 = vld [vmem:[%s2643_s9 + $0x30] sm:$0xff] }
 0x59a   : > { %v2069_v42 = vpack.c.bf16 %v1694_v41, %v1693_v40 }
 0x59b   : > { %1983 = vmatmul.mubr.msk.f32.vlgmr.msra.gmra.mrb[6].mxu1 %vm683_vm7, %v1170_v48 }
 0x59c   : > { %1986 = vmatpush3.xpose.msk.msra.mxu1 %vm528_vm6, %v1250_v45  ;;  %1987 = vmatprep.mubr.msk.f32.mxu1 %vm2233_vm1, %v2234_v9 }
 0x59d   : > { %1990 = vmatprep.subr.mxu1 %v2234_v9 }
 0x59f   : > { %1988 = vmatmul.mubr.msk.f32.vlgmr.msra.gmra.mrb[8].mxu1 %vm528_vm6, %v1248_v47 }
 0x5a0   : > { %1991 = vmatpush3.xpose.msk.msra.mxu1 %vm528_vm6, %v1328_v22  ;;  %1992 = vmatprep.mubr.msk.f32.mxu1 %vm2233_vm1, %v2234_v9 }
 0x5a1   : > { %2053 = vmatprep.subr.bf16.mxu1 %v2232_v6 }
 0x5a7   : > { %1993 = vmatmul.mubr.msk.f32.vlgmr.msra.gmra.mrb[8].mxu1 %vm528_vm6, %v1326_v49 }
 0x5a8   : > { %2019 = vmatprep.mubr.msk.f32.mxu1 %vm2233_vm1, %v2234_v9  ;;  %2055 = vmatpush3.bf16.msra.mxu1 %v2054_v21 }
 0x5a9   : > { %2056 = vmatprep.subr.bf16.mxu1 %v2232_v6 }
 0x66e   : > { %v1243_v50 = vpop.f32.mrb[6].mxu1 }
 0x66f   : > { %1492 = vrot.lane.b32.xlu1 %v1243_v50, %s2237_s11  ;;  %v1984_v51 = vpop.f32.mrb[7].mxu1 }
 0x67a   : > { %v1399_v52 = vpop.f32.mrb[8].mxu1 }
 0x67b   : > { %v1403_v53 = vmul.f32 0.35355338, %v1399_v52  ;;  %v1994_v54 = vpop.f32.mrb[9].mxu1 }
 0x67d   : > { %v1404_v55 = vmul.f32 %v1403_v53, %v2459_v5 }
 0x67f   : > { %v1405_v56 = vsel %vm683_vm7, %v1404_v55, 0.0 }
 0x680   : > { %1406 = vadd.xlane.f32.xlu0 %v1405_v56 }
 0x696   : > { %1488 = vrot.lane.b32.xlu0 %v1003_v35, %s2256_s26  ;;  %v1690_v35 = vld [vmem:[%s2643_s9 + $0x18] sm:$0xff] }
 0x6e1   : > { %v1493_v8 = vpop.permute.xlu1 %1492 }
 0x70d   : > { %v1407_v57 = vpop.xlane.xlu0 %1406 }
 0x70e   : > { %v1408_v58 = vadd.f32 1e-08, %v1407_v57 }
 0x710   : > { %2160 = vrcp.f32 %v1408_v58 }
 0x711   : > { %v1489_v7 = vpop.permute.xlu0 %1488 }
 0x712   : > { %v1499_v10 = vsel %vm683_vm7, %v2495_v33, %v1489_v7  ;;  %v1689_v33 = vld [vmem:[%s2643_s9 + $0x10] sm:$0xff] }
 0x713   : > { %v1501_v12 = vsel %vm1500_vm8, %v1499_v10, %v1493_v8  ;;  %v2063_v36 = vpack.c.bf16 %v1690_v35, %v1689_v33 }
 0x71a   : > { %v2161_v59 = vpop.eup %2160 }
 0x71b   : > { %v1410_v60 = vmul.f32 %v2161_v59, %v1404_v55 }
 0x71d   : > { %1998 = vmatmul.mubr.msk.f32.vlgmr.msra.gmra.mrb[6].mxu0 %vm683_vm7, %v1410_v60 }
 0x71e   : > { %2008 = vmatprep.mubr.msk.f32.mxu0 %vm2233_vm1, %v2234_v9  ;;  %2049 = vmatpush3.bf16.msra.mxu0 %v2048_v1 }
 0x71f   : > { %2050 = vmatprep.subr.bf16.mxu0 %v2232_v6 }
 0x722   : > { %2052 = vmatpush3.bf16.msra.mxu0 %v2051_v3 }
 0x723   : > { %2059 = vmatprep.subr.bf16.mxu0 %v2232_v6 }
 0x7f0   : > { %v1483_v4 = vpop.f32.mrb[6].mxu0 }
 0x7f1   : > { %1496 = vrot.lane.b32.xlu1 %v1483_v4, %s2257_s29  ;;  %v1999_v5 = vpop.f32.mrb[7].mxu0  ;;  %s350_s29 = scalar_lea.vmem [#allocation2], %s1848_s21  ;;  %s2174_s21 = scalar_lea.vmem %s2173_s18, 256 }
 0x7f2   : > { %s1785_s26 = sshll.u32 %s350_s29, 4  ;;  %s2593_s26 = int_to_ptr.vmem [resolvable:$true] %s1785_s26 }
 0x7f3   : > { %s2168_s12 = scalar_lea.vmem %s2593_s26, 128  ;;  %p2175_p0 = scmp.lt.s32.totalorder %s2593_s26, %s2173_s18 }
 0x7f4   : > { %p2169_p11 = scmp.ne.s32.totalorder %s2593_s26, %s2168_s12  ;;  %p2176_p1 = scmp.lt.s32.totalorder %s2174_s21, %s2168_s12 }
 0x7f6   : > { %p2170_p12 = pnand %p2169_p11, %p2352_p5  ;;  %p2177_p2 = por %p2176_p1, %p2175_p0 }
 0x7f8   : > { %p2171_p13 = pneg %p2170_p12 }
 0x7fa   : > { %p2178_p3 = pnand %p2177_p2, %p2171_p13 }
 0x863   : > { %v1497_v11 = vpop.permute.xlu1 %1496 }
 0x864   : > { %v1503_v13 = vsel %vm1502_vm9, %v1501_v12, %v1497_v11 }
 0x865   : > { %2009 = vmatmul.mubr.msk.f32.vlgmr.msra.gmra.mrb[8].mxu0 %vm357_vm0, %v1503_v13 }
 0x866   : > { %2038 = vmatprep.mubr.msk.f32.mxu0 %vm2233_vm1, %v2234_v9  ;;  %v1601_v9 = vld [vmem:[%s2642_s8 + $0x18] sm:$0xff]  ;;  %2061 = vmatpush3.bf16.msra.mxu0 %v2060_v34 }
 0x867   : > { %2062 = vmatprep.subr.bf16.mxu0 %v2232_v6 }
 0x86a   : > { %2064 = vmatpush3.bf16.msra.mxu0 %v2063_v36 }
 0x86b   : > { %2065 = vmatprep.subr.bf16.mxu0 %v2232_v6 }
 0x86e   : > { %2067 = vmatpush3.bf16.msra.mxu0 %v2066_v39 }
 0x86f   : > { %2068 = vmatprep.subr.bf16.mxu0 %v2232_v6 }
 0x872   : > { %2070 = vmatpush3.bf16.msra.mxu0 %v2069_v42 }
 0x938   : > { %v1577_v14 = vpop.f32.mrb[8].mxu0 }
 0x939   : > { %v1581_v15 = vadd.f32 %v1577_v14, %v2367_v0  ;;  %v2010_v16 = vpop.f32.mrb[9].mxu0  ;;  %v1600_v0 = vld [vmem:[%s2642_s8 + $0x10] sm:$0xff] }
 0x93a   : > { %v2057_v23 = vpack.c.bf16 %v1601_v9, %v1600_v0 }
 0x93b   : > { %v1582_v17 = vmul.f32 %v1581_v15, %v1581_v15 }
 0x93c   : > { %2058 = vmatpush3.bf16.msra.mxu1 %v2057_v23 }
 0x93d   : > { %v1583_v18 = vsel %vm357_vm0, %v1582_v17, 0.0 }
 0x93e   : > { %1584 = vadd.xlane.f32.xlu1 %v1583_v18 }
 0x9cb   : > { %v1585_v24 = vpop.xlane.xlu1 %1584 }
 0x9cc   : > { %v1586_v25 = vmul.f32 0.03125, %v1585_v24 }
 0x9ce   : > { %v1587_v26 = vadd.f32 1e-05, %v1586_v25 }
 0x9d0   : > { %2162 = vrsqrt.f32 %v1587_v26 }
 0x9da   : > { %v2163_v27 = vpop.eup %2162 }
 0x9db   : > { %v1589_v29 = vmul.f32 %v2163_v27, %v1581_v15 }
 0x9dd   : > { %v1597_v30 = vmul.f32 %v1873_v28, %v1589_v29 }
 0x9df   : > { %2020 = vmatmul.mubr.msk.f32.vlgmr.msra.gmra.mrb[10].mxu1 %vm357_vm0, %v1597_v30 }
 0xab2   : > { %v1671_v43 = vpop.f32.mrb[10].mxu1 }
 0xab3   : > { %1683 = vrot.lane.b32.xlu0 %v1671_v43, %s2248_s28  ;;  %v2021_v44 = vpop.f32.mrb[11].mxu1  ;;  %v1875_v45 = vmul.f32 -1.442695, %v1671_v43 }
 0xab5   : > { %2164 = vpow2.f32 %v1875_v45 }
 0xabf   : > { %v2165_v46 = vpop.eup %2164 }
 0xac0   : > { %v1678_v47 = vadd.f32 1.0, %v2165_v46 }
 0xac2   : > { %2166 = vrcp.f32 %v1678_v47 }
 0xacc   : > { %v2167_v48 = vpop.eup %2166 }
 0xacd   : > { %v1681_v22 = vmul.f32 %v2167_v48, %v1671_v43 }
 0xb25   : > { %v1684_v49 = vpop.permute.xlu0 %1683 }
 0xb26   : > { %v1686_v50 = vmul.f32 %v1684_v49, %v1681_v22 }
 0xb28   : > { %2039 = vmatmul.mubr.msk.f32.vlgmr.msra.gmra.mrb[10].mxu0 %vm1695_vm10, %v1686_v50 }
 0xbfb   : > { %v1765_v6 = vpop.f32.mrb[10].mxu0 }
 0xbfc   : > { %v1769_v51 = vadd.f32 %v1765_v6, %v1581_v15  ;;  %v2040_v52 = vpop.f32.mrb[11].mxu0 }
 0xbfe   : > { %1770 = vst.msk [vmem:[%s350_s29] sm:$0xff] %vm357_vm0, %v1769_v51 }
 0xbff   : > { %2181 = shalt.err (!%p2178_p3)
}
 0xc00   : > { %s2182_s20 = scalar_lea.hbm %s2591_s27, 128  ;;  %s2186_s28 = scalar_lea.hbm %s2644_s10, 256 }
 0xc01   : > { %p2183_p4 = scmp.ne.s32.totalorder %s2591_s27, %s2182_s20  ;;  %p2187_p9 = scmp.lt.u32.totalorder %s2591_s27, %s2644_s10 }
 0xc02   : > { %p2188_p10 = scmp.lt.u32.totalorder %s2186_s28, %s2182_s20  ;;  %p2190_p12 = scmp.lt.u32.totalorder %s2182_s20, %s2591_s27 }
 0xc03   : > { %p2184_p7 = pnand %p2183_p4, %p2352_p5 }
 0xc04   : > { %p2189_p11 = por %p2188_p10, %p2187_p9 }
 0xc05   : > { %p2185_p8 = pneg %p2184_p7 }
 0xc06   : > { %p2191_p13 = por %p2190_p12, %p2189_p11 }
 0xc08   : > { %p2192_p0 = pnand %p2191_p13, %p2185_p8 }
 0xc0a   : > { %2195 = shalt.err (!%p2192_p0)
}
 0xc0b   : > { %2079 = dma.vmem_to_hbm [thread:$0]  (%p2352_p5), %s2593_s26, 128, %s2591_s27, %s1772_s30  }
 0xc0c PF: > { %p2085_p1 = scmp.ge.s32.totalorder %s2230_s16, 2  ;;  %s1797_s12 = sand.u32 1, %s2218_s13  }
 0xc0d   : > { %s1798_s18 = scalar_lea.sflag [#allocation3], %s1797_s12 }
 0xc0e   : > { %p2082_p2 = pnand %p2085_p1, %p2356_p6 }
 0xc10   : > { %2213 = dma.done.wait (!%p2082_p2), %s1798_s18, 128  }
 0xc11   : > { %2215 = vsyncadd (!%p2082_p2), %s1798_s18, 4294967168  ;;  %p20_p3 = scmp.ge.s32.totalorder %s2339_s19, 4   ;;  %s2647_s13 = smov %s2222_s14 }
 0xc12   : > { %s2648_s14 = smov %s2226_s15  ;;  %s2649_s15 = smov %s2350_s22 }
 0xc13   : > { %s2650_s16 = smov %s2339_s19  ;;  %22 = sbr.rel (!%p20_p3) target bundleno = 3 (0x3), region = 95 }
 0xc1a   :  { %1803 = vsyncpa [#allocation3], 1 }
 0xc1b   :  { %1805 = vsyncpa [#allocation3 + $0x1], 1 }

</bundles_post_ra>
